<compile_context>
chip_gen: v5e
topology: v5e:2x2
jax: 0.10.0
libtpu: 0.0.40
codegen_flags: <defaults>
</compile_context>

<pallas_src>
import functools

import jax
import jax.numpy as jnp
from jax.experimental import pallas as pl
from jax.experimental.pallas import tpu as pltpu

INPUT_SIZE = 9
HIDDEN = 36
OUTPUT_SIZE = 9

# Padded (TPU-friendly) dims.
IN_P = 32      # input feature rows padded to the int8 sublane tile (32)
HID_P = 48     # hidden rows padded to a multiple of 8 (and the bf16 tile of 16)
OUT_P = 16     # output rows padded to a multiple of 8/16
SLAB_COLS = 256

# Column layout inside the bf16 parameter slab (shape [HID_P, SLAB_COLS]):
#   W1: rows :HID_P, cols   0:IN_P          ([36, 9]  zero-padded, PyTorch [out,in])
#   W2: rows :HID_P, cols  32:32+HID_P      ([36, 36] zero-padded)
#   W3: rows :OUT_P, cols  80:80+HID_P      ([9, 36]  zero-padded)
#   b1: rows :HID_P, col  128
#   b2: rows :HID_P, col  129
#   b3: rows :OUT_P, col  130
_W1_C0 = 0
_W2_C0 = _W1_C0 + IN_P          # 32
_W3_C0 = _W2_C0 + HID_P         # 80
_B1_C = _W3_C0 + HID_P          # 128
_B2_C = _B1_C + 1               # 129
_B3_C = _B2_C + 1               # 130


def tictacnet_kernel(p_ref, x_ref, o_ref):
    # x tile: [IN_P, TB] int8 (batch on the 128-lane axis) -> bf16 for the MXU.
    x = x_ref[...].astype(jnp.bfloat16)

    # Static slices of the resident parameter slab (zero-padded, bf16).
    w1 = p_ref[:, _W1_C0:_W1_C0 + IN_P]              # [HID_P, IN_P]
    w2 = p_ref[:, _W2_C0:_W2_C0 + HID_P]             # [HID_P, HID_P]
    w3 = p_ref[0:OUT_P, _W3_C0:_W3_C0 + HID_P]       # [OUT_P, HID_P]
    b1 = p_ref[:, _B1_C:_B1_C + 1].astype(jnp.float32)         # [HID_P, 1]
    b2 = p_ref[:, _B2_C:_B2_C + 1].astype(jnp.float32)         # [HID_P, 1]
    b3 = p_ref[0:OUT_P, _B3_C:_B3_C + 1].astype(jnp.float32)   # [OUT_P, 1]

    # Layer 1: W1 @ X + b1, relu  (bf16 operands, f32 accumulation on the MXU)
    h1 = jnp.dot(w1, x, preferred_element_type=jnp.float32) + b1
    h1 = jnp.maximum(h1, 0.0)

    # Layer 2
    h2 = jnp.dot(w2, h1.astype(jnp.bfloat16),
                 preferred_element_type=jnp.float32) + b2
    h2 = jnp.maximum(h2, 0.0)

    # Output layer + sigmoid. sigmoid(z) = 0.5 * (tanh(z/2) + 1) -> EUP slot.
    logits = jnp.dot(w3, h2.astype(jnp.bfloat16),
                     preferred_element_type=jnp.float32) + b3
    o_ref[...] = 0.5 * (jnp.tanh(0.5 * logits) + 1.0)


def _round_up(n, m):
    return ((n + m - 1) // m) * m


def pack_params(params):
    """Pack (W, b) x 3 (PyTorch [out, in] / [out] layout, f32) into one bf16 slab."""
    (w1, b1), (w2, b2), (w3, b3) = params
    slab = jnp.zeros((HID_P, SLAB_COLS), jnp.float32)
    slab = slab.at[:HIDDEN, _W1_C0:_W1_C0 + INPUT_SIZE].set(w1)
    slab = slab.at[:HIDDEN, _W2_C0:_W2_C0 + HIDDEN].set(w2)
    slab = slab.at[:OUTPUT_SIZE, _W3_C0:_W3_C0 + HIDDEN].set(w3)
    slab = slab.at[:HIDDEN, _B1_C].set(b1)
    slab = slab.at[:HIDDEN, _B2_C].set(b2)
    slab = slab.at[:OUTPUT_SIZE, _B3_C].set(b3)
    return slab.astype(jnp.bfloat16)


@functools.partial(jax.jit, static_argnames=("tb",))
def tictacnet_forward(x_int8, param_slab, *, tb=512):
    """x_int8: [B, 9] int8 board encodings -> [B, 9] f32 probabilities."""
    B = x_int8.shape[0]
    TB = min(tb, _round_up(B, 128))      # batch tile, sits on the 128-lane axis
    B_pad = _round_up(B, TB)

    # Lane-dense feature-major layout: [IN_P, B_pad], zero-padded.
    x_t = jnp.zeros((IN_P, B_pad), jnp.int8)
    x_t = x_t.at[:INPUT_SIZE, :B].set(x_int8.T)

    out = pl.pallas_call(
        tictacnet_kernel,
        out_shape=jax.ShapeDtypeStruct((OUT_P, B_pad), jnp.float32),
        grid=(B_pad // TB,),
        in_specs=[
            # Parameter slab: constant index_map -> single DMA, stays resident.
            pl.BlockSpec((HID_P, SLAB_COLS), lambda i: (0, 0)),
            # Input tile: streamed & double-buffered over the batch.
            pl.BlockSpec((IN_P, TB), lambda i: (0, i)),
        ],
        out_specs=pl.BlockSpec((OUT_P, TB), lambda i: (0, i)),
        compiler_params=pltpu.CompilerParams(
            # Batch tiles are independent -> shard across v7x's 2 TensorCores.
            dimension_semantics=("parallel",),
        ),
    )(param_slab, x_t)

    # Drop feature/batch padding, back to batch-major [B, 9].
    return out[:OUTPUT_SIZE, :B].T


def init_params(key):
    """nn.Linear-style init: U(-1/sqrt(fan_in), +1/sqrt(fan_in)); W is [out, in]."""
    def linear(k, fan_in, fan_out):
        kw, kb = jax.random.split(k)
        bound = 1.0 / jnp.sqrt(jnp.float32(fan_in))
        w = jax.random.uniform(kw, (fan_out, fan_in), jnp.float32, -bound, bound)
        b = jax.random.uniform(kb, (fan_out,), jnp.float32, -bound, bound)
        return w, b

    k1, k2, k3 = jax.random.split(key, 3)
    return (
        linear(k1, INPUT_SIZE, HIDDEN),
        linear(k2, HIDDEN, HIDDEN),
        linear(k3, HIDDEN, OUTPUT_SIZE),
    )


def reference_forward_f32(x, params):
    """Pure f32 reference (original module semantics)."""
    (w1, b1), (w2, b2), (w3, b3) = params
    h = jnp.maximum(x.astype(jnp.float32) @ w1.T + b1, 0.0)
    h = jnp.maximum(h @ w2.T + b2, 0.0)
    return jax.nn.sigmoid(h @ w3.T + b3)


def reference_forward_bf16(x, params):
    """Mirrors the kernel's bf16-operand / f32-accumulation numerics."""
    bf, f32 = jnp.bfloat16, jnp.float32
    (w1, b1), (w2, b2), (w3, b3) = params
    h = x.astype(bf)
    h = jnp.maximum(jnp.dot(h, w1.astype(bf).T, preferred_element_type=f32)
                    + b1.astype(bf).astype(f32), 0.0)
    h = jnp.maximum(jnp.dot(h.astype(bf), w2.astype(bf).T, preferred_element_type=f32)
                    + b2.astype(bf).astype(f32), 0.0)
    logits = (jnp.dot(h.astype(bf), w3.astype(bf).T, preferred_element_type=f32)
              + b3.astype(bf).astype(f32))
    return jax.nn.sigmoid(logits)


def _check(x, params, slab, *, tb=512):
    out = jax.block_until_ready(tictacnet_forward(x, slab, tb=tb))
    assert out.shape == (x.shape[0], OUTPUT_SIZE)
    ref_bf16 = reference_forward_bf16(x, params)   # same bf16/f32 mixed precision
    ref_f32 = reference_forward_f32(x, params)     # original f32 semantics
    assert jnp.allclose(out, ref_bf16, atol=2e-3, rtol=0.0), \
        float(jnp.max(jnp.abs(out - ref_bf16)))
    assert jnp.allclose(out, ref_f32, atol=5e-2, rtol=0.0), \
        float(jnp.max(jnp.abs(out - ref_f32)))
    return out


if __name__ == "__main__":
    key = jax.random.PRNGKey(0)
    kp, kx1, kx2 = jax.random.split(key, 3)

    params = init_params(kp)
    slab = pack_params(params)

    # Small deterministic batch of tic-tac-toe boards, values in {-1, 0, 1} (int8).
    x_small = jax.random.randint(kx1, (8, INPUT_SIZE), -1, 2).astype(jnp.int8)
    _check(x_small, params, slab)

    # Secondary check: non-multiple batch with a multi-tile grid (3 tiles of 128).
    x_multi = jax.random.randint(kx2, (300, INPUT_SIZE), -1, 2).astype(jnp.int8)
    _check(x_multi, params, slab, tb=128)

    print("KERNEL_OK")
</pallas_src>

<mosaic_0001>
module attributes {stable_mosaic.version = 11 : i64} {
  func.func @tictacnet_kernel(%arg0: i32, %arg1: memref<48x256xbf16, #tpu.memory_space<vmem>>, %arg2: memref<32x128xi8, #tpu.memory_space<vmem>>, %arg3: memref<16x128xf32, #tpu.memory_space<vmem>>) attributes {dimension_semantics = [#tpu.dimension_semantics<parallel>], iteration_bounds = array<i64: 1>, scalar_prefetch = 0 : i64, scratch_operands = 0 : i64, tpu.core_type = #tpu.core_type<tc>, window_params = [{pipeline_mode = #tpu.pipeline_mode<synchronous>, transform_indices = @transform_0, window_bounds = array<i64: 48, 256>}, {transform_indices = @transform_1, window_bounds = array<i64: 32, 128>}, {transform_indices = @transform_2, window_bounds = array<i64: 16, 128>}]} {
    %c0 = arith.constant 0 : index
    %c0_0 = arith.constant 0 : index
    %0 = vector.load %arg2[%c0, %c0_0] : memref<32x128xi8, #tpu.memory_space<vmem>>, vector<32x128xi8>
    %1 = arith.sitofp %0 : vector<32x128xi8> to vector<32x128xbf16>
    %c0_1 = arith.constant 0 : index
    %c0_2 = arith.constant 0 : index
    %2 = vector.load %arg1[%c0_1, %c0_2] : memref<48x256xbf16, #tpu.memory_space<vmem>>, vector<48x32xbf16>
    %c0_3 = arith.constant 0 : index
    %c32 = arith.constant 32 : index
    %3 = vector.load %arg1[%c0_3, %c32] : memref<48x256xbf16, #tpu.memory_space<vmem>>, vector<48x48xbf16>
    %c0_4 = arith.constant 0 : index
    %c80 = arith.constant 80 : index
    %4 = vector.load %arg1[%c0_4, %c80] : memref<48x256xbf16, #tpu.memory_space<vmem>>, vector<16x48xbf16>
    %c0_5 = arith.constant 0 : index
    %c128 = arith.constant 128 : index
    %5 = vector.load %arg1[%c0_5, %c128] : memref<48x256xbf16, #tpu.memory_space<vmem>>, vector<48x1xbf16>
    %6 = arith.extf %5 : vector<48x1xbf16> to vector<48x1xf32>
    %c0_6 = arith.constant 0 : index
    %c129 = arith.constant 129 : index
    %7 = vector.load %arg1[%c0_6, %c129] : memref<48x256xbf16, #tpu.memory_space<vmem>>, vector<48x1xbf16>
    %8 = arith.extf %7 : vector<48x1xbf16> to vector<48x1xf32>
    %c0_7 = arith.constant 0 : index
    %c130 = arith.constant 130 : index
    %9 = vector.load %arg1[%c0_7, %c130] : memref<48x256xbf16, #tpu.memory_space<vmem>>, vector<16x1xbf16>
    %10 = arith.extf %9 : vector<16x1xbf16> to vector<16x1xf32>
    %cst = arith.constant dense<0.000000e+00> : vector<48x128xf32>
    %11 = tpu.matmul %2, %1, %cst {dimension_numbers = #tpu.dot_dimension_numbers<[1], [0], [0], [1], [0, 0, 1, 1], [], []>} : vector<48x32xbf16>, vector<32x128xbf16>, vector<48x128xf32> -> vector<48x128xf32>
    %12 = vector.broadcast %6 : vector<48x1xf32> to vector<48x128xf32>
    %13 = arith.addf %11, %12 : vector<48x128xf32>
    %cst_8 = arith.constant 0.000000e+00 : f32
    %14 = vector.broadcast %cst_8 : f32 to vector<48x128xf32>
    %15 = arith.maximumf %13, %14 : vector<48x128xf32>
    %16 = arith.truncf %15 : vector<48x128xf32> to vector<48x128xbf16>
    %cst_9 = arith.constant dense<0.000000e+00> : vector<48x128xf32>
    %17 = tpu.matmul %3, %16, %cst_9 {dimension_numbers = #tpu.dot_dimension_numbers<[1], [0], [0], [1], [0, 0, 1, 1], [], []>} : vector<48x48xbf16>, vector<48x128xbf16>, vector<48x128xf32> -> vector<48x128xf32>
    %18 = vector.broadcast %8 : vector<48x1xf32> to vector<48x128xf32>
    %19 = arith.addf %17, %18 : vector<48x128xf32>
    %cst_10 = arith.constant 0.000000e+00 : f32
    %20 = vector.broadcast %cst_10 : f32 to vector<48x128xf32>
    %21 = arith.maximumf %19, %20 : vector<48x128xf32>
    %22 = arith.truncf %21 : vector<48x128xf32> to vector<48x128xbf16>
    %cst_11 = arith.constant dense<0.000000e+00> : vector<16x128xf32>
    %23 = tpu.matmul %4, %22, %cst_11 {dimension_numbers = #tpu.dot_dimension_numbers<[1], [0], [0], [1], [0, 0, 1, 1], [], []>} : vector<16x48xbf16>, vector<48x128xbf16>, vector<16x128xf32> -> vector<16x128xf32>
    %24 = vector.broadcast %10 : vector<16x1xf32> to vector<16x128xf32>
    %25 = arith.addf %23, %24 : vector<16x128xf32>
    %cst_12 = arith.constant 5.000000e-01 : f32
    %26 = vector.broadcast %cst_12 : f32 to vector<16x128xf32>
    %27 = arith.mulf %26, %25 : vector<16x128xf32>
    %28 = math.tanh %27 : vector<16x128xf32>
    %cst_13 = arith.constant 1.000000e+00 : f32
    %29 = vector.broadcast %cst_13 : f32 to vector<16x128xf32>
    %30 = arith.addf %28, %29 : vector<16x128xf32>
    %cst_14 = arith.constant 5.000000e-01 : f32
    %31 = vector.broadcast %cst_14 : f32 to vector<16x128xf32>
    %32 = arith.mulf %31, %30 : vector<16x128xf32>
    %c0_15 = arith.constant 0 : index
    %c0_16 = arith.constant 0 : index
    %33 = vector.load %arg3[%c0_15, %c0_16] : memref<16x128xf32, #tpu.memory_space<vmem>>, vector<16x128xf32>
    tpu.vector_store %arg3[%c0_15, %c0_16], %32 {strides = array<i32>} : memref<16x128xf32, #tpu.memory_space<vmem>>, vector<16x128xf32>,
    return
  }
  func.func @transform_0(%arg0: i32) -> (i32, i32) {
    %c0_i32 = arith.constant 0 : i32
    %c0_i32_0 = arith.constant 0 : i32
    %c0_i32_1 = arith.constant 0 : i32
    return %c0_i32, %c0_i32_0 : i32, i32
  }
  func.func @transform_1(%arg0: i32) -> (i32, i32) {
    %c0_i32 = arith.constant 0 : i32
    %c0_i32_0 = arith.constant 0 : i32
    return %c0_i32, %arg0 : i32, i32
  }
  func.func @transform_2(%arg0: i32) -> (i32, i32) {
    %c0_i32 = arith.constant 0 : i32
    %c0_i32_0 = arith.constant 0 : i32
    return %c0_i32, %arg0 : i32, i32
  }
}

</mosaic_0001>

<bundles_post_ra>
// kernel: tictacnet_forward.1
= control target key start
LH: loop header
LB: loop body
LE: loop exit
PB: predicated region body
PF: predicated region fallthrough
CT: control target
= control target key end

     0   :  { %7 = vsyncpa [#allocation3], 0  ;;  %s373_s12 = smov [#allocation2]   ;;  %s374_s14 = smov 128   ;;  %s412_s0 = inlined_call_operand.hbm [shape: bf16[48,256], index: 0, kind: input, shape index: {}]   ;;  %s413_s1 = inlined_call_operand.vmem [shape: s8[32,128], index: 1, kind: input, shape index: {}]   ;;  %s414_s2 = inlined_call_operand.vmem [shape: f32[16,128], index: 2, kind: output, shape index: {}]  }
   0x1   :  { %s12_s11 = sshll.u32 %s412_s0, 4  ;;  %s14_s13 = sshll.u32 %s373_s12, 4  ;;  %s13_s11 = int_to_ptr.hbm [resolvable:$true] %s12_s11  ;;  %s15_s13 = int_to_ptr.vmem [resolvable:$true] %s14_s13 }
   0x2   :  { %s375_s15 = smov 8  }
   0x3   :  { %20 = dma.hbm_to_vmem [thread:$0]  %s13_s11, 768, %s15_s13, [#allocation3], %s374_s14, %s374_s14, %s375_s15  }
   0x4   :  { %371 = dma.done.wait [#allocation3], 768  }
   0x5   :  { %372 = vsyncadd [#allocation3], 4294966528  ;;  %v376_v0 = vmov 0   ;;  %v28_v1 = vld [vmem:[%s413_s1] sm:$0xff]  ;;  %v287_v7 = vld [vmem:[#allocation2 + $0x24] sm:$0xf0] }
   0x6   :  { %312 = vset.pattern.permute.xlu1 %v376_v0  ;;  %301 = vset.pattern.permute.xlu0 %v376_v0  ;;  %v31_v2 = vunpack.c.2.s8 %v28_v1  ;;  %v32_v3 = vunpack.c.3.s8 %v28_v1  ;;  %v29_v4 = vunpack.c.0.s8 %v28_v1  ;;  %v30_v5 = vunpack.c.1.s8 %v28_v1  ;;  %v276_v6 = vld [vmem:[#allocation2 + $0x20] sm:$0xf]  ;;  %v45_v8 = vld [vmem:[#allocation2 + $0x4] sm:$0xf]  ;;  %v46_v10 = vld [vmem:[#allocation2 + $0xc] sm:$0xf] }
   0x7   :  { %v277_v9 = vor.u32 %v287_v7, %v276_v6  ;;  %v51_v11 = vunpack.c.l.bf16 %v45_v8  ;;  %v49_v16 = vld [vmem:[#allocation2 + $0x24] sm:$0xf]  ;;  %v50_v17 = vld [vmem:[#allocation2 + $0x2c] sm:$0xf]  ;;  %v52_v18 = vunpack.c.l.bf16 %v46_v10  ;;  %s377_s0 = smov 96   ;;  %vm106_vm0 = vcmask 261120  }
   0x8   :  { %v35_v12 = vcvt.s32.f32 %v31_v2  ;;  %v36_v13 = vcvt.s32.f32 %v32_v3  ;;  %v33_v14 = vcvt.s32.f32 %v29_v4  ;;  %v34_v15 = vcvt.s32.f32 %v30_v5  ;;  %v47_v22 = vld [vmem:[#allocation2 + $0x14] sm:$0xf]  ;;  %v48_v23 = vld [vmem:[#allocation2 + $0x1c] sm:$0xf]  ;;  %v268_v27 = vld [vmem:[#allocation2] sm:$0xf] }
   0x9   :  { %v55_v19 = vunpack.c.l.bf16 %v49_v16  ;;  %v56_v20 = vunpack.c.l.bf16 %v50_v17  ;;  %177 = vrot.lane.b32.xlu2 %v277_v9, %s377_s0  ;;  %v313_v24 = vpack.i.bf16 %v52_v18, %v51_v11  ;;  %v285_v28 = vld [vmem:[#allocation2 + $0x4] sm:$0xf0]  ;;  %v53_v29 = vunpack.c.l.bf16 %v47_v22  ;;  %v272_v32 = vld [vmem:[#allocation2 + $0x10] sm:$0xf]  ;;  %v286_v33 = vld [vmem:[#allocation2 + $0x14] sm:$0xf0] }
   0xa   :  { %v38_v21 = vpack.c.bf16 %v36_v13, %v35_v12  ;;  %v37_v26 = vpack.c.bf16 %v34_v15, %v33_v14  ;;  %v54_v30 = vunpack.c.l.bf16 %v48_v23  ;;  %v269_v31 = vor.u32 %v285_v28, %v268_v27  ;;  %s379_s1 = smov 48   ;;  %v57_v8 = vld [vmem:[#allocation2 + $0x4] sm:$0xf] }
   0xb   :  { %v302_v25 = vpack.i.bf16 %v56_v20, %v55_v19  ;;  %314 = vperm.xlu1 %312, %v313_v24   ;;  %v273_v35 = vor.u32 %v286_v33, %v272_v32  ;;  %v378_v42 = vmov 1   ;;  %vm179_vm1 = vcmask 392192  }
   0xc   :  { %122 = vmatpush.bf16.msra.mxu0 %v38_v21  ;;  %288 = vmatpush.bf16.msra.mxu1 %v38_v21  ;;  %v307_v34 = vpack.i.bf16 %v54_v30, %v53_v29  ;;  %v380_v10 = vmov 2   ;;  %v59_v11 = vunpack.c.l.bf16 %v57_v8 }
   0xd   :  { %303 = vperm.xlu0 %301, %v302_v25   ;;  %330 = vset.pattern.permute.xlu2 %v378_v42 }
  0x10   :  { %123 = vmatpush.bf16.msra.mxu0 %v37_v26  ;;  %289 = vmatpush.bf16.msra.mxu1 %v37_v26 }
  0x11   :  { %173 = vrot.lane.b32.xlu2 %v269_v31, %s377_s0 }
  0x13   :  { %278 = vmatmul.msk.bf16.vlgmr.msra.gmra.mxu0 %vm106_vm0, %v269_v31  ;;  %280 = vmatmul.msk.bf16.vlgmr.msra.gmra.mxu1 %vm106_vm0, %v277_v9  ;;  %v58_v9 = vld [vmem:[#allocation2 + $0xc] sm:$0xf] }
  0x14   :  { %175 = vrot.lane.b32.xlu1 %v273_v35, %s377_s0  ;;  %v60_v12 = vunpack.c.l.bf16 %v58_v9 }
  0x15   :  { %308 = vperm.xlu0 %301, %v307_v34   ;;  %324 = vset.pattern.permute.xlu1 %v378_v42 }
  0x16   :  { %v337_v13 = vpack.i.bf16 %v60_v12, %v59_v11 }
  0x19   :  { %332 = vperm.xlu2 %330, %v313_v24  }
  0x1c   :  { %326 = vperm.xlu1 %324, %v307_v34  }
  0x1d   :  { %318 = vset.pattern.permute.xlu0 %v378_v42 }
  0x1e   :  { %320 = vperm.xlu0 %318, %v302_v25  }
  0x21   :  { %336 = vset.pattern.permute.xlu2 %v380_v10 }
  0x22   :  { %338 = vperm.xlu2 %336, %v337_v13  }
  0x23   :  { %279 = vmatmul.msk.bf16.gmra.mxu0 %vm106_vm0, %v273_v35 }
  0x24   :  { %232 = vrot.lane.b32.xlu1 %v269_v31, %s379_s1 }
  0x26   :  { %342 = vset.pattern.permute.xlu0 %v380_v10 }
  0x63   :  { %v178_v60 = vpop.permute.xlu2 %177 }
  0x6b   :  { %v174_v5 = vpop.permute.xlu2 %173 }
  0x73   :  { %v333_v21 = vpop.permute.xlu2 %332 }
  0x74   :  { %v335_v26 = vunpack.i.h.bf16 %v333_v21  ;;  %v334_v27 = vunpack.i.l.bf16 %v333_v21 }
  0x7d   :  { %v315_v52 = vpop.permute.xlu1 %314 }
  0x7e   :  { %v317_v53 = vunpack.i.h.bf16 %v315_v52  ;;  %v316_v54 = vunpack.i.l.bf16 %v315_v52 }
  0x7f   :  { %v304_v36 = vpop.permute.xlu0 %303 }
  0x80   :  { %v305_v39 = vunpack.i.l.bf16 %v304_v36  ;;  %v306_v40 = vunpack.i.h.bf16 %v304_v36 }
  0x86   :  { %v176_v4 = vpop.permute.xlu1 %175 }
  0x87   :  { %v309_v49 = vpop.permute.xlu0 %308 }
  0x88   :  { %v310_v51 = vunpack.i.l.bf16 %v309_v49  ;;  %v311_v55 = vunpack.i.h.bf16 %v309_v49 }
  0x8e   :  { %v327_v18 = vpop.permute.xlu1 %326 }
  0x8f   :  { %v329_v19 = vunpack.i.h.bf16 %v327_v18  ;;  %v328_v22 = vunpack.i.l.bf16 %v327_v18 }
  0x90   :  { %v125_v37 = vpop.f32.mrf.mxu0  ;;  %v135_v38 = vpop.f32.mrf.mxu1 }
  0x91   :  { %v136_v41 = vadd.f32 %v305_v39, %v135_v38  ;;  %v126_v61 = vadd.f32 %v316_v54, %v125_v37  ;;  %v321_v14 = vpop.permute.xlu0 %320 }
  0x92   :  { %v322_v17 = vunpack.i.l.bf16 %v321_v14  ;;  %v323_v20 = vunpack.i.h.bf16 %v321_v14 }
  0x93   :  { %v144_v46 = vmax.f32 %v136_v41, 0.0  ;;  %v140_v2 = vmax.f32 %v126_v61, 0.0 }
  0x96   :  { %v233_v42 = vpop.permute.xlu1 %232 }
  0x98   :  { %v127_v43 = vpop.f32.mrf.mxu0  ;;  %v137_v44 = vpop.f32.mrf.mxu1 }
  0x99   :  { %v138_v45 = vadd.f32 %v306_v40, %v137_v44  ;;  %v128_v58 = vadd.f32 %v317_v53, %v127_v43  ;;  %v339_v43 = vpop.permute.xlu2 %338 }
  0x9a   :  { %v340_v44 = vunpack.i.l.bf16 %v339_v43 }
  0x9b   :  { %v145_v47 = vmax.f32 %v138_v45, 0.0  ;;  %v141_v0 = vmax.f32 %v128_v58, 0.0 }
  0x9d   :  { %v148_v48 = vpack.c.bf16 %v145_v47, %v144_v46  ;;  %v146_v3 = vpack.c.bf16 %v141_v0, %v140_v2 }
  0x9f   :  { %194 = vmatpush.bf16.msrb.mxu1 %v148_v48  ;;  %290 = vmatpush.bf16.msra.mxu3 %v148_v48  ;;  %v341_v48 = vunpack.i.h.bf16 %v339_v43 }
  0xa0   :  { %v130_v50 = vpop.f32.mrf.mxu0 }
  0xa1   :  { %v131_v56 = vadd.f32 %v310_v51, %v130_v50 }
  0xa3   :  { %v142_v62 = vmax.f32 %v131_v56, 0.0 }
  0xa8   :  { %v132_v57 = vpop.f32.mrf.mxu0 }
  0xa9   :  { %v133_v59 = vadd.f32 %v311_v55, %v132_v57 }
  0xab   :  { %v143_v63 = vmax.f32 %v133_v59, 0.0 }
  0xad   :  { %v147_v1 = vpack.c.bf16 %v143_v63, %v142_v62 }
  0xaf   :  { %195 = vmatpush.bf16.msrb.mxu1 %v147_v1  ;;  %291 = vmatpush.bf16.msra.mxu3 %v147_v1 }
  0xb3   :  { %196 = vmatpush.bf16.msrb.mxu1 %v146_v3  ;;  %292 = vmatpush.bf16.msra.mxu3 %v146_v3 }
  0xb6   :  { %282 = vmatmul.msk.bf16.vlgmr.msra.gmra.mxu3 %vm179_vm1, %v176_v4  ;;  %281 = vmatmul.msk.bf16.vlgmr.msrb.gmra.mxu1 %vm179_vm1, %v174_v5 }
  0xc6   :  { %283 = vmatmul.msk.bf16.gmra.mxu3 %vm179_vm1, %v178_v60 }
 0x133   :  { %v198_v15 = vpop.f32.mrf.mxu1 }
 0x134   :  { %v199_v34 = vadd.f32 %v334_v27, %v198_v15 }
 0x136   :  { %v213_v40 = vmax.f32 %v199_v34, 0.0 }
 0x139   :  { %v203_v6 = vpop.f32.mrf.mxu3 }
 0x13a   :  { %v204_v30 = vadd.f32 %v328_v22, %v203_v6 }
 0x13b   :  { %v200_v29 = vpop.f32.mrf.mxu1 }
 0x13c   :  { %v201_v35 = vadd.f32 %v335_v26, %v200_v29  ;;  %v215_v37 = vmax.f32 %v204_v30, 0.0 }
 0x13e   :  { %v214_v38 = vmax.f32 %v201_v35, 0.0 }
 0x140   :  { %v219_v41 = vpack.c.bf16 %v214_v38, %v213_v40 }
 0x141   :  { %v205_v7 = vpop.f32.mrf.mxu3 }
 0x142   :  { %v206_v25 = vadd.f32 %v329_v19, %v205_v7 }
 0x144   :  { %v216_v33 = vmax.f32 %v206_v25, 0.0 }
 0x146   :  { %v220_v39 = vpack.c.bf16 %v216_v33, %v215_v37 }
 0x149   :  { %v208_v16 = vpop.f32.mrf.mxu3 }
 0x14a   :  { %v209_v23 = vadd.f32 %v322_v17, %v208_v16 }
 0x14c   :  { %v217_v31 = vmax.f32 %v209_v23, 0.0 }
 0x151   :  { %v210_v24 = vpop.f32.mrf.mxu3 }
 0x152   :  { %v211_v28 = vadd.f32 %v323_v20, %v210_v24 }
 0x154   :  { %v218_v32 = vmax.f32 %v211_v28, 0.0 }
 0x156   :  { %v221_v36 = vpack.c.bf16 %v218_v32, %v217_v31 }
 0x158   :  { %242 = vmatpush.bf16.msra.mxu2 %v221_v36 }
 0x15c   :  { %243 = vmatpush.bf16.msra.mxu2 %v220_v39 }
 0x160   :  { %244 = vmatpush.bf16.msra.mxu2 %v219_v41 }
 0x163   :  { %284 = vmatmul.msk.bf16.vlgmr.msra.gmra.mxu2 %vm179_vm1, %v233_v42 }
 0x1e6   :  { %v246_v45 = vpop.f32.mrf.mxu2 }
 0x1e7   :  { %v247_v46 = vadd.f32 %v340_v44, %v246_v45 }
 0x1e9   :  { %v251_v47 = vmul.f32 0.5, %v247_v46 }
 0x1eb   :  { %343 = vtanh.f32 %v251_v47 }
 0x1ee   :  { %v248_v49 = vpop.f32.mrf.mxu2 }
 0x1ef   :  { %v249_v50 = vadd.f32 %v341_v48, %v248_v49 }
 0x1f1   :  { %v344_v51 = vpop.eup %343  ;;  %v252_v52 = vmul.f32 0.5, %v249_v50 }
 0x1f2   :  { %v255_v53 = vadd.f32 1.0, %v344_v51 }
 0x1f3   :  { %345 = vtanh.f32 %v252_v52 }
 0x1f4   :  { %v257_v54 = vmul.f32 0.5, %v255_v53 }
 0x1f6   :  { %259 = vst [vmem:[%s414_s2] sm:$0xff] %v257_v54 }
 0x1f9   :  { %v346_v55 = vpop.eup %345 }
 0x1fa   :  { %v256_v56 = vadd.f32 1.0, %v346_v55 }
 0x1fc   :  { %v258_v57 = vmul.f32 0.5, %v256_v56 }
 0x1fe   :  { %260 = vst [vmem:[%s414_s2 + $0x8] sm:$0xff] %v258_v57 }
 0x1ff   :  { %265 = vsyncpa [#allocation3], 1 }

</bundles_post_ra>
